<compile_context>
chip_gen: v5e
topology: v5e:2x2
jax: 0.10.0
libtpu: 0.0.40
codegen_flags: <defaults>
</compile_context>

<pallas_src>
import functools

import jax
import jax.numpy as jnp
import numpy as np
from jax.experimental import pallas as pl
from jax.experimental.pallas import tpu as pltpu

MAX_LENGTH = 16
PAD_token = 0


# ----------------------------------------------------------------------------
# Weight packing: many tiny tensors -> one contiguous (R, 128) VMEM buffer,
# sliced with static offsets inside the kernel (zero-cost views).
# ----------------------------------------------------------------------------
def _pack_rows(named_mats, lane_width=128):
    """Pack (name, (rows, cols<=128)) f32 matrices row-wise into one (R, 128)
    buffer.  Returns (packed, {name: (row_off, rows, cols)})."""
    offsets = {}
    chunks = []
    off = 0
    for name, m in named_mats:
        m = jnp.asarray(m, jnp.float32)
        r, c = m.shape
        assert c <= lane_width, f"{name}: {c} > {lane_width}"
        offsets[name] = (off, r, c)
        chunks.append(jnp.pad(m, ((0, 0), (0, lane_width - c))))
        off += r
    pad_rows = (-off) % 8                      # keep total sublane-aligned
    if pad_rows:
        chunks.append(jnp.zeros((pad_rows, lane_width), jnp.float32))
    return jnp.concatenate(chunks, axis=0), offsets


# ----------------------------------------------------------------------------
# Pallas kernel: attention + softmax + weighted sum + attn_combine + one GRU
# step + output projection.  All matmuls are concat-free (split weights).
# ----------------------------------------------------------------------------
def decoder_step_kernel(emb_ref, h_ref, encf_ref, enc3_ref, wpack_ref, bias_ref,
                        logits_ref, hnew_ref, *, cfg):
    H, ML = cfg['H'], cfg['ML']
    w_off, b_off = cfg['w_off'], cfg['b_off']

    def W(name):                               # static-offset weight view (in, out)
        off, r, c = w_off[name]
        return wpack_ref[off:off + r, 0:c]

    def B(name):                               # (1, c) bias row, broadcasts over batch
        off, r, c = b_off[name]
        return bias_ref[off:off + r, 0:c]

    emb = emb_ref[...]                         # (bp, H)   embedded token (dropout=identity)
    h = h_ref[...]                             # (bp, H)   previous decoder hidden
    encf = encf_ref[...]                       # (bp*L, 2H) flat encoder outputs
    enc3 = enc3_ref[...]                       # (bp, L, 2H) same data, batch-major 3D
    bp_, L = enc3.shape[0], enc3.shape[1]

    # --- attention: tanh([h ; enc] @ W_attn^T + b) summed over the attn dim
    h_part = jnp.dot(h, W('awh'), preferred_element_type=jnp.float32) + B('attn_b')   # (bp, ML)
    e_flat = jnp.dot(encf, W('awe'), preferred_element_type=jnp.float32)              # (bp*L, ML)
    score = jnp.tanh(e_flat.reshape(bp_, L, ML) + h_part[:, None, :])                 # (bp, L, ML)
    s = jnp.sum(score, axis=-1, keepdims=True)                                        # (bp, L, 1)

    # softmax over the source-length axis, reciprocal on the EUP
    m = jnp.max(s, axis=1, keepdims=True)
    e = jnp.exp(s - m)
    w = e * pl.reciprocal(jnp.sum(e, axis=1, keepdims=True), approx=True)             # (bp, L, 1)
    weighted = jnp.sum(w * enc3, axis=1)                                              # (bp, 2H)

    # --- attn_combine: Linear([embedded ; weighted]) as a split 2-matmul sum
    gru_x = (jnp.dot(emb, W('cw_e'), preferred_element_type=jnp.float32)
             + jnp.dot(weighted, W('cw_w'), preferred_element_type=jnp.float32)
             + B('comb_b'))                                                           # (bp, H)

    # --- single GRU step (PyTorch gate order: r, z, n)
    gx = jnp.dot(gru_x, W('wih'), preferred_element_type=jnp.float32) + B('b_ih')     # (bp, 3H)
    gh = jnp.dot(h, W('whh'), preferred_element_type=jnp.float32) + B('b_hh')         # (bp, 3H)
    r = jax.nn.sigmoid(gx[:, 0:H] + gh[:, 0:H])
    z = jax.nn.sigmoid(gx[:, H:2 * H] + gh[:, H:2 * H])
    n = jnp.tanh(gx[:, 2 * H:3 * H] + r * gh[:, 2 * H:3 * H])
    h_new = (1.0 - z) * n + z * h                                                     # (bp, H)

    # --- output projection over [gru_output ; weighted ; embedded], split 3 ways,
    #     written lane-dense into the padded (bp, 128) vocab block.
    logits = (jnp.dot(h_new, W('ow_h'), preferred_element_type=jnp.float32)
              + jnp.dot(weighted, W('ow_w'), preferred_element_type=jnp.float32)
              + jnp.dot(emb, W('ow_e'), preferred_element_type=jnp.float32)
              + B('out_b'))                                                           # (bp, Vp)

    logits_ref[...] = logits
    hnew_ref[...] = h_new


# ----------------------------------------------------------------------------
# One-time parameter prep (hoisted out of the per-step forward).
# ----------------------------------------------------------------------------
def prepare_params(params, max_length):
    H = params['W_ih'].shape[1]
    V = params['out_W'].shape[0]
    ML = max_length
    Vp = ((V + 127) // 128) * 128              # lane-dense vocab padding

    attn_Wt = params['attn_W'].T.astype(jnp.float32)      # (3H, ML)
    comb_Wt = params['comb_W'].T.astype(jnp.float32)      # (3H, H)
    out_Wt = params['out_W'].T.astype(jnp.float32)        # (4H, V)
    padV = lambda a: jnp.pad(a, ((0, 0), (0, Vp - V)))

    weight_mats = [
        ('awh', attn_Wt[:H]), ('awe', attn_Wt[H:]),                 # attn split: hidden / enc
        ('cw_e', comb_Wt[:H]), ('cw_w', comb_Wt[H:]),               # combine split: emb / weighted
        ('wih', params['W_ih'].T.astype(jnp.float32)),              # (H, 3H)
        ('whh', params['W_hh'].T.astype(jnp.float32)),              # (H, 3H)
        ('ow_h', padV(out_Wt[:H])),                                 # out split: gru / weighted / emb
        ('ow_w', padV(out_Wt[H:3 * H])),
        ('ow_e', padV(out_Wt[3 * H:])),
    ]
    bias_mats = [
        ('attn_b', params['attn_b'][None, :]),
        ('comb_b', params['comb_b'][None, :]),
        ('b_ih', params['b_ih'][None, :]),
        ('b_hh', params['b_hh'][None, :]),
        ('out_b', jnp.pad(params['out_b'], (0, Vp - V))[None, :]),
    ]
    W_pack, w_off = _pack_rows(weight_mats)
    B_pack, b_off = _pack_rows(bias_mats)

    prepped = dict(embedding=params['embedding'].astype(jnp.float32),
                   W_pack=W_pack, B_pack=B_pack)
    meta = dict(H=H, V=V, Vp=Vp, ML=ML, w_off=w_off, b_off=b_off)
    return prepped, meta


# ----------------------------------------------------------------------------
# Forward wrapper (glue: embedding gather, layout padding, output slicing)
# ----------------------------------------------------------------------------
def decoder_rnn_forward(prepped, meta, input_tokens, dec_hidden, enc_outputs):
    """
    input_tokens: (1, b) int32
    dec_hidden:   (1, b, H) f32
    enc_outputs:  (L, b, 2H) f32
    returns: (logits (b, V), new_hidden (1, b, H))
    """
    H, V, Vp, ML = meta['H'], meta['V'], meta['Vp'], meta['ML']
    b = input_tokens.shape[1]
    L = enc_outputs.shape[0]
    bp = ((b + 7) // 8) * 8                    # sublane-pad the batch

    # embedding lookup (padding_idx row of the table is zero) -- glue
    emb = jnp.take(prepped['embedding'], input_tokens[0], axis=0)        # (b, H)
    # TODO(synk): nn.Dropout is identity in eval mode; training-mode dropout not implemented.
    h0 = dec_hidden[0].astype(jnp.float32)                               # (b, H)
    enc = jnp.transpose(enc_outputs, (1, 0, 2)).astype(jnp.float32)      # (b, L, 2H)

    pad_b = bp - b
    emb_p = jnp.pad(emb, ((0, pad_b), (0, 0)))
    h0_p = jnp.pad(h0, ((0, pad_b), (0, 0)))
    enc_p = jnp.pad(enc, ((0, pad_b), (0, 0), (0, 0)))                   # (bp, L, 2H)
    enc_flat = enc_p.reshape(bp * L, 2 * H)                              # hoisted reshape

    cfg = dict(H=H, ML=ML, w_off=meta['w_off'], b_off=meta['b_off'])
    kernel = functools.partial(decoder_step_kernel, cfg=cfg)

    # advisory cost estimate for XLA scheduling
    flops = (2 * bp * H * ML                       # h @ awh
             + 2 * (bp * L) * (2 * H) * ML         # enc @ awe
             + 2 * bp * H * H + 2 * bp * (2 * H) * H   # attn_combine (split)
             + 2 * 2 * bp * H * (3 * H)            # GRU gx, gh
             + 2 * bp * (4 * H) * Vp)              # output projection (split)
    transcendentals = bp * L * ML + bp * L + 3 * bp * H + bp
    inputs = (emb_p, h0_p, enc_flat, enc_p, prepped['W_pack'], prepped['B_pack'])
    bytes_accessed = sum(int(x.size) * 4 for x in inputs) + (bp * Vp + bp * H) * 4

    vmem = pl.BlockSpec(memory_space=pltpu.MemorySpace.VMEM)
    logits_p, hnew_p = pl.pallas_call(
        kernel,
        out_shape=(jax.ShapeDtypeStruct((bp, Vp), jnp.float32),
                   jax.ShapeDtypeStruct((bp, H), jnp.float32)),
        in_specs=[vmem] * len(inputs),
        out_specs=(vmem, vmem),
        cost_estimate=pl.CostEstimate(flops=flops, transcendentals=transcendentals,
                                      bytes_accessed=bytes_accessed),
    )(*inputs)

    return logits_p[:b, :V], hnew_p[:b][None, :, :]


# ----------------------------------------------------------------------------
# Deterministic parameter init (PyTorch shapes: Linear weight is (out, in))
# ----------------------------------------------------------------------------
def init_params(key, hidden_size, vocab_size, max_length):
    H, V, ML = hidden_size, vocab_size, max_length
    ks = jax.random.split(key, 11)

    def u(k, shape, fan_in):
        bound = 1.0 / np.sqrt(fan_in)
        return jax.random.uniform(k, shape, jnp.float32, -bound, bound)

    emb = jax.random.normal(ks[0], (V, H), jnp.float32) * 0.1
    emb = emb.at[PAD_token].set(0.0)                 # padding_idx=PAD_token
    return dict(
        embedding=emb,
        attn_W=u(ks[1], (ML, 3 * H), 3 * H), attn_b=u(ks[2], (ML,), 3 * H),
        comb_W=u(ks[3], (H, 3 * H), 3 * H), comb_b=u(ks[4], (H,), 3 * H),
        W_ih=u(ks[5], (3 * H, H), H), W_hh=u(ks[6], (3 * H, H), H),
        b_ih=u(ks[7], (3 * H,), H), b_hh=u(ks[8], (3 * H,), H),
        out_W=u(ks[9], (V, 4 * H), 4 * H), out_b=u(ks[10], (V,), 4 * H),
    )


# ----------------------------------------------------------------------------
# Pure-JAX reference (mirrors the PyTorch forward exactly, eval mode)
# ----------------------------------------------------------------------------
def reference_forward(params, input_tokens, dec_hidden, enc_outputs):
    H = dec_hidden.shape[-1]
    emb = jnp.take(params['embedding'], input_tokens[0], axis=0)        # (b, H)
    h = dec_hidden[0]                                                   # (b, H)
    enc = jnp.transpose(enc_outputs, (1, 0, 2))                         # (b, L, 2H)
    b, L, _ = enc.shape

    rep_h = jnp.broadcast_to(h[:, None, :], (b, L, H))
    score_in = jnp.concatenate([rep_h, enc], axis=2)                    # (b, L, 3H)
    score = jnp.tanh(score_in @ params['attn_W'].T + params['attn_b'])  # (b, L, ML)
    w = jax.nn.softmax(score.sum(-1), axis=1)                           # (b, L)
    weighted = jnp.einsum('bl,bld->bd', w, enc)                         # (b, 2H)

    gru_x = jnp.concatenate([emb, weighted], 1) @ params['comb_W'].T + params['comb_b']
    gx = gru_x @ params['W_ih'].T + params['b_ih']
    gh = h @ params['W_hh'].T + params['b_hh']
    r = jax.nn.sigmoid(gx[:, :H] + gh[:, :H])
    z = jax.nn.sigmoid(gx[:, H:2 * H] + gh[:, H:2 * H])
    n = jnp.tanh(gx[:, 2 * H:] + r * gh[:, 2 * H:])
    h_new = (1.0 - z) * n + z * h
    logits = jnp.concatenate([h_new, weighted, emb], 1) @ params['out_W'].T + params['out_b']
    return logits, h_new[None]


if __name__ == "__main__":
    H, V, ML = 32, 64, MAX_LENGTH
    b, L = 4, 8

    key = jax.random.PRNGKey(0)
    kp, kt, kh, ke = jax.random.split(key, 4)
    params = init_params(kp, H, V, ML)
    prepped, meta = prepare_params(params, ML)       # one-time prep, hoisted from the step

    input_tokens = jax.random.randint(kt, (1, b), 0, V, dtype=jnp.int32)        # (1, b)
    dec_hidden = jax.random.normal(kh, (1, b, H), jnp.float32)                  # (1, b, H)
    enc_outputs = jax.random.normal(ke, (L, b, 2 * H), jnp.float32)             # (L, b, 2H)

    logits, h_new = jax.block_until_ready(
        decoder_rnn_forward(prepped, meta, input_tokens, dec_hidden, enc_outputs))

    assert logits.shape == (b, V) and h_new.shape == (1, b, H)

    ref_logits, ref_h = reference_forward(params, input_tokens, dec_hidden, enc_outputs)
    # Tightened from 2e-2; 5e-3 leaves headroom only for the approximate EUP
    # reciprocal in the softmax denominator (everything else is exact f32).
    np.testing.assert_allclose(np.asarray(logits), np.asarray(ref_logits), rtol=5e-3, atol=5e-3)
    np.testing.assert_allclose(np.asarray(h_new), np.asarray(ref_h), rtol=5e-3, atol=5e-3)

    print("KERNEL_OK")
</pallas_src>

<mosaic_0001>
module attributes {stable_mosaic.version = 11 : i64} {
  func.func @decoder_step_kernel(%arg0: memref<8x32xf32, #tpu.memory_space<vmem>>, %arg1: memref<8x32xf32, #tpu.memory_space<vmem>>, %arg2: memref<64x64xf32, #tpu.memory_space<vmem>>, %arg3: memref<8x8x64xf32, #tpu.memory_space<vmem>>, %arg4: memref<384x128xf32, #tpu.memory_space<vmem>>, %arg5: memref<8x128xf32, #tpu.memory_space<vmem>>, %arg6: memref<8x128xf32, #tpu.memory_space<vmem>>, %arg7: memref<8x32xf32, #tpu.memory_space<vmem>>) attributes {dimension_semantics = [], scalar_prefetch = 0 : i64, scratch_operands = 0 : i64, tpu.core_type = #tpu.core_type<tc>} {
    %c0 = arith.constant 0 : index
    %c0_0 = arith.constant 0 : index
    %0 = vector.load %arg0[%c0, %c0_0] : memref<8x32xf32, #tpu.memory_space<vmem>>, vector<8x32xf32>
    %c0_1 = arith.constant 0 : index
    %c0_2 = arith.constant 0 : index
    %1 = vector.load %arg1[%c0_1, %c0_2] : memref<8x32xf32, #tpu.memory_space<vmem>>, vector<8x32xf32>
    %c0_3 = arith.constant 0 : index
    %c0_4 = arith.constant 0 : index
    %2 = vector.load %arg2[%c0_3, %c0_4] : memref<64x64xf32, #tpu.memory_space<vmem>>, vector<64x64xf32>
    %c0_5 = arith.constant 0 : index
    %c0_6 = arith.constant 0 : index
    %c0_7 = arith.constant 0 : index
    %3 = vector.load %arg3[%c0_5, %c0_6, %c0_7] : memref<8x8x64xf32, #tpu.memory_space<vmem>>, vector<8x8x64xf32>
    %c0_8 = arith.constant 0 : index
    %c0_9 = arith.constant 0 : index
    %4 = vector.load %arg4[%c0_8, %c0_9] : memref<384x128xf32, #tpu.memory_space<vmem>>, vector<32x16xf32>
    %cst = arith.constant dense<0.000000e+00> : vector<8x16xf32>
    %5 = tpu.matmul %1, %4, %cst {dimension_numbers = #tpu.dot_dimension_numbers<[1], [0], [0], [1], [0, 0, 1, 1], [], []>} : vector<8x32xf32>, vector<32x16xf32>, vector<8x16xf32> -> vector<8x16xf32>
    %c0_10 = arith.constant 0 : index
    %c0_11 = arith.constant 0 : index
    %6 = vector.load %arg5[%c0_10, %c0_11] : memref<8x128xf32, #tpu.memory_space<vmem>>, vector<1x16xf32>
    %7 = vector.broadcast %6 : vector<1x16xf32> to vector<8x16xf32>
    %8 = arith.addf %5, %7 : vector<8x16xf32>
    %c32 = arith.constant 32 : index
    %c0_12 = arith.constant 0 : index
    %9 = vector.load %arg4[%c32, %c0_12] : memref<384x128xf32, #tpu.memory_space<vmem>>, vector<64x16xf32>
    %cst_13 = arith.constant dense<0.000000e+00> : vector<64x16xf32>
    %10 = tpu.matmul %2, %9, %cst_13 {dimension_numbers = #tpu.dot_dimension_numbers<[1], [0], [0], [1], [0, 0, 1, 1], [], []>} : vector<64x64xf32>, vector<64x16xf32>, vector<64x16xf32> -> vector<64x16xf32>
    %11 = vector.shape_cast %10 : vector<64x16xf32> to vector<8x8x16xf32>
    %12 = vector.shape_cast %8 : vector<8x16xf32> to vector<8x1x16xf32>
    %13 = vector.broadcast %12 : vector<8x1x16xf32> to vector<8x8x16xf32>
    %14 = arith.addf %11, %13 : vector<8x8x16xf32>
    %15 = math.tanh %14 : vector<8x8x16xf32>
    %cst_14 = arith.constant dense<0.000000e+00> : vector<8x8xf32>
    %16 = vector.multi_reduction <add>, %15, %cst_14 [2] : vector<8x8x16xf32> to vector<8x8xf32>
    %17 = vector.shape_cast %16 : vector<8x8xf32> to vector<8x8x1xf32>
    %cst_15 = arith.constant dense<0xFF800000> : vector<8x1xf32>
    %18 = vector.multi_reduction <maximumf>, %17, %cst_15 [1] : vector<8x8x1xf32> to vector<8x1xf32>
    %19 = vector.shape_cast %18 : vector<8x1xf32> to vector<8x1x1xf32>
    %20 = vector.broadcast %19 : vector<8x1x1xf32> to vector<8x8x1xf32>
    %21 = arith.subf %17, %20 : vector<8x8x1xf32>
    %22 = math.exp %21 : vector<8x8x1xf32>
    %cst_16 = arith.constant dense<0.000000e+00> : vector<8x1xf32>
    %23 = vector.multi_reduction <add>, %22, %cst_16 [1] : vector<8x8x1xf32> to vector<8x1xf32>
    %24 = vector.shape_cast %23 : vector<8x1xf32> to vector<8x1x1xf32>
    %25 = tpu.reciprocal %24 {approx = true} : vector<8x1x1xf32> -> vector<8x1x1xf32>
    %26 = vector.broadcast %25 : vector<8x1x1xf32> to vector<8x8x1xf32>
    %27 = arith.mulf %22, %26 : vector<8x8x1xf32>
    %28 = vector.broadcast %27 : vector<8x8x1xf32> to vector<8x8x64xf32>
    %29 = arith.mulf %28, %3 : vector<8x8x64xf32>
    %cst_17 = arith.constant dense<0.000000e+00> : vector<8x64xf32>
    %30 = vector.multi_reduction <add>, %29, %cst_17 [1] : vector<8x8x64xf32> to vector<8x64xf32>
    %c96 = arith.constant 96 : index
    %c0_18 = arith.constant 0 : index
    %31 = vector.load %arg4[%c96, %c0_18] : memref<384x128xf32, #tpu.memory_space<vmem>>, vector<32x32xf32>
    %cst_19 = arith.constant dense<0.000000e+00> : vector<8x32xf32>
    %32 = tpu.matmul %0, %31, %cst_19 {dimension_numbers = #tpu.dot_dimension_numbers<[1], [0], [0], [1], [0, 0, 1, 1], [], []>} : vector<8x32xf32>, vector<32x32xf32>, vector<8x32xf32> -> vector<8x32xf32>
    %c128 = arith.constant 128 : index
    %c0_20 = arith.constant 0 : index
    %33 = vector.load %arg4[%c128, %c0_20] : memref<384x128xf32, #tpu.memory_space<vmem>>, vector<64x32xf32>
    %cst_21 = arith.constant dense<0.000000e+00> : vector<8x32xf32>
    %34 = tpu.matmul %30, %33, %cst_21 {dimension_numbers = #tpu.dot_dimension_numbers<[1], [0], [0], [1], [0, 0, 1, 1], [], []>} : vector<8x64xf32>, vector<64x32xf32>, vector<8x32xf32> -> vector<8x32xf32>
    %35 = arith.addf %32, %34 : vector<8x32xf32>
    %c1 = arith.constant 1 : index
    %c0_22 = arith.constant 0 : index
    %36 = vector.load %arg5[%c1, %c0_22] : memref<8x128xf32, #tpu.memory_space<vmem>>, vector<1x32xf32>
    %37 = vector.broadcast %36 : vector<1x32xf32> to vector<8x32xf32>
    %38 = arith.addf %35, %37 : vector<8x32xf32>
    %c192 = arith.constant 192 : index
    %c0_23 = arith.constant 0 : index
    %39 = vector.load %arg4[%c192, %c0_23] : memref<384x128xf32, #tpu.memory_space<vmem>>, vector<32x96xf32>
    %cst_24 = arith.constant dense<0.000000e+00> : vector<8x96xf32>
    %40 = tpu.matmul %38, %39, %cst_24 {dimension_numbers = #tpu.dot_dimension_numbers<[1], [0], [0], [1], [0, 0, 1, 1], [], []>} : vector<8x32xf32>, vector<32x96xf32>, vector<8x96xf32> -> vector<8x96xf32>
    %c2 = arith.constant 2 : index
    %c0_25 = arith.constant 0 : index
    %41 = vector.load %arg5[%c2, %c0_25] : memref<8x128xf32, #tpu.memory_space<vmem>>, vector<1x96xf32>
    %42 = vector.broadcast %41 : vector<1x96xf32> to vector<8x96xf32>
    %43 = arith.addf %40, %42 : vector<8x96xf32>
    %c224 = arith.constant 224 : index
    %c0_26 = arith.constant 0 : index
    %44 = vector.load %arg4[%c224, %c0_26] : memref<384x128xf32, #tpu.memory_space<vmem>>, vector<32x96xf32>
    %cst_27 = arith.constant dense<0.000000e+00> : vector<8x96xf32>
    %45 = tpu.matmul %1, %44, %cst_27 {dimension_numbers = #tpu.dot_dimension_numbers<[1], [0], [0], [1], [0, 0, 1, 1], [], []>} : vector<8x32xf32>, vector<32x96xf32>, vector<8x96xf32> -> vector<8x96xf32>
    %c3 = arith.constant 3 : index
    %c0_28 = arith.constant 0 : index
    %46 = vector.load %arg5[%c3, %c0_28] : memref<8x128xf32, #tpu.memory_space<vmem>>, vector<1x96xf32>
    %47 = vector.broadcast %46 : vector<1x96xf32> to vector<8x96xf32>
    %48 = arith.addf %45, %47 : vector<8x96xf32>
    %49 = vector.extract_strided_slice %43 {offsets = [0, 0], sizes = [8, 32], strides = [1, 1]} : vector<8x96xf32> to vector<8x32xf32>
    %50 = vector.extract_strided_slice %48 {offsets = [0, 0], sizes = [8, 32], strides = [1, 1]} : vector<8x96xf32> to vector<8x32xf32>
    %51 = arith.addf %49, %50 : vector<8x32xf32>
    %52 = arith.negf %51 : vector<8x32xf32>
    %53 = math.exp %52 : vector<8x32xf32>
    %cst_29 = arith.constant 1.000000e+00 : f32
    %54 = vector.broadcast %cst_29 : f32 to vector<8x32xf32>
    %55 = arith.addf %54, %53 : vector<8x32xf32>
    %56 = arith.divf %54, %55 : vector<8x32xf32>
    %57 = vector.extract_strided_slice %43 {offsets = [0, 32], sizes = [8, 32], strides = [1, 1]} : vector<8x96xf32> to vector<8x32xf32>
    %58 = vector.extract_strided_slice %48 {offsets = [0, 32], sizes = [8, 32], strides = [1, 1]} : vector<8x96xf32> to vector<8x32xf32>
    %59 = arith.addf %57, %58 : vector<8x32xf32>
    %60 = arith.negf %59 : vector<8x32xf32>
    %61 = math.exp %60 : vector<8x32xf32>
    %cst_30 = arith.constant 1.000000e+00 : f32
    %62 = vector.broadcast %cst_30 : f32 to vector<8x32xf32>
    %63 = arith.addf %62, %61 : vector<8x32xf32>
    %64 = arith.divf %62, %63 : vector<8x32xf32>
    %65 = vector.extract_strided_slice %43 {offsets = [0, 64], sizes = [8, 32], strides = [1, 1]} : vector<8x96xf32> to vector<8x32xf32>
    %66 = vector.extract_strided_slice %48 {offsets = [0, 64], sizes = [8, 32], strides = [1, 1]} : vector<8x96xf32> to vector<8x32xf32>
    %67 = arith.mulf %56, %66 : vector<8x32xf32>
    %68 = arith.addf %65, %67 : vector<8x32xf32>
    %69 = math.tanh %68 : vector<8x32xf32>
    %cst_31 = arith.constant 1.000000e+00 : f32
    %70 = vector.broadcast %cst_31 : f32 to vector<8x32xf32>
    %71 = arith.subf %70, %64 : vector<8x32xf32>
    %72 = arith.mulf %71, %69 : vector<8x32xf32>
    %73 = arith.mulf %64, %1 : vector<8x32xf32>
    %74 = arith.addf %72, %73 : vector<8x32xf32>
    %c256 = arith.constant 256 : index
    %c0_32 = arith.constant 0 : index
    %75 = vector.load %arg4[%c256, %c0_32] : memref<384x128xf32, #tpu.memory_space<vmem>>, vector<32x128xf32>
    %cst_33 = arith.constant dense<0.000000e+00> : vector<8x128xf32>
    %76 = tpu.matmul %74, %75, %cst_33 {dimension_numbers = #tpu.dot_dimension_numbers<[1], [0], [0], [1], [0, 0, 1, 1], [], []>} : vector<8x32xf32>, vector<32x128xf32>, vector<8x128xf32> -> vector<8x128xf32>
    %c288 = arith.constant 288 : index
    %c0_34 = arith.constant 0 : index
    %77 = vector.load %arg4[%c288, %c0_34] : memref<384x128xf32, #tpu.memory_space<vmem>>, vector<64x128xf32>
    %cst_35 = arith.constant dense<0.000000e+00> : vector<8x128xf32>
    %78 = tpu.matmul %30, %77, %cst_35 {dimension_numbers = #tpu.dot_dimension_numbers<[1], [0], [0], [1], [0, 0, 1, 1], [], []>} : vector<8x64xf32>, vector<64x128xf32>, vector<8x128xf32> -> vector<8x128xf32>
    %79 = arith.addf %76, %78 : vector<8x128xf32>
    %c352 = arith.constant 352 : index
    %c0_36 = arith.constant 0 : index
    %80 = vector.load %arg4[%c352, %c0_36] : memref<384x128xf32, #tpu.memory_space<vmem>>, vector<32x128xf32>
    %cst_37 = arith.constant dense<0.000000e+00> : vector<8x128xf32>
    %81 = tpu.matmul %0, %80, %cst_37 {dimension_numbers = #tpu.dot_dimension_numbers<[1], [0], [0], [1], [0, 0, 1, 1], [], []>} : vector<8x32xf32>, vector<32x128xf32>, vector<8x128xf32> -> vector<8x128xf32>
    %82 = arith.addf %79, %81 : vector<8x128xf32>
    %c4 = arith.constant 4 : index
    %c0_38 = arith.constant 0 : index
    %83 = vector.load %arg5[%c4, %c0_38] : memref<8x128xf32, #tpu.memory_space<vmem>>, vector<1x128xf32>
    %84 = vector.broadcast %83 : vector<1x128xf32> to vector<8x128xf32>
    %85 = arith.addf %82, %84 : vector<8x128xf32>
    %c0_39 = arith.constant 0 : index
    %c0_40 = arith.constant 0 : index
    %86 = vector.load %arg6[%c0_39, %c0_40] : memref<8x128xf32, #tpu.memory_space<vmem>>, vector<8x128xf32>
    tpu.vector_store %arg6[%c0_39, %c0_40], %85 {strides = array<i32>} : memref<8x128xf32, #tpu.memory_space<vmem>>, vector<8x128xf32>,
    %c0_41 = arith.constant 0 : index
    %c0_42 = arith.constant 0 : index
    %87 = vector.load %arg7[%c0_41, %c0_42] : memref<8x32xf32, #tpu.memory_space<vmem>>, vector<8x32xf32>
    tpu.vector_store %arg7[%c0_41, %c0_42], %74 {strides = array<i32>} : memref<8x32xf32, #tpu.memory_space<vmem>>, vector<8x32xf32>,
    return
  }
}

</mosaic_0001>

<bundles_post_ra>
// kernel: tpu_custom_call.1
= control target key start
LH: loop header
LB: loop body
LE: loop exit
PB: predicated region body
PF: predicated region fallthrough
CT: control target
= control target key end

     0   :  { %13 = vsyncpa [#allocation3], 0  ;;  %s1275_s0 = inlined_call_operand.hbm [shape: f32[8,32], index: 0, kind: input, shape index: {}]   ;;  %s1276_s1 = inlined_call_operand.hbm [shape: f32[8,32], index: 1, kind: input, shape index: {}]   ;;  %s1277_s2 = inlined_call_operand.hbm [shape: f32[64,64], index: 2, kind: input, shape index: {}]   ;;  %s1278_s3 = inlined_call_operand.hbm [shape: f32[8,8,64], index: 3, kind: input, shape index: {}]   ;;  %s1279_s4 = inlined_call_operand.hbm [shape: f32[384,128], index: 4, kind: input, shape index: {}]   ;;  %s1280_s5 = inlined_call_operand.hbm [shape: f32[8,128], index: 5, kind: input, shape index: {}]   ;;  %s1281_s6 = inlined_call_operand.hbm [shape: f32[8,128], index: 6, kind: output, shape index: {0}]   ;;  %s1282_s7 = inlined_call_operand.hbm [shape: f32[8,32], index: 7, kind: output, shape index: {1}]  }
   0x1   :  { %14 = vsyncpa [#allocation6], 0 }
   0x2   :  { %15 = vsyncpa [#allocation9], 0 }
   0x3   :  { %16 = vsyncpa [#allocation12], 0 }
   0x4   :  { %17 = vsyncpa [#allocation4], 0  ;;  %s35_s26 = sshll.u32 %s1276_s1, 4  ;;  %s36_s26 = int_to_ptr.hbm [resolvable:$true] %s35_s26 }
   0x5   :  { %18 = vsyncpa [#allocation15], 0  ;;  %s1114_s27 = smov [#allocation5]   ;;  %s58_s8 = sshll.u32 %s1278_s3, 4  ;;  %s59_s8 = int_to_ptr.hbm [resolvable:$true] %s58_s8 }
   0x6   :  { %s37_s28 = sshll.u32 %s1114_s27, 4  ;;  %s1115_s9 = smov [#allocation8]   ;;  %s38_s28 = int_to_ptr.vmem [resolvable:$true] %s37_s28 }
   0x7   :  { %40 = dma.hbm_to_vmem [thread:$0]  %s36_s26, 128, %s38_s28, [#allocation6]  }
   0x8   :  { %s60_s10 = sshll.u32 %s1115_s9, 4  ;;  %s24_s13 = sshll.u32 %s1275_s0, 4  ;;  %s61_s10 = int_to_ptr.vmem [resolvable:$true] %s60_s10  ;;  %s25_s13 = int_to_ptr.hbm [resolvable:$true] %s24_s13 }
   0x9   :  { %s1116_s1 = smov 128   ;;  %s1117_s14 = smov 8  }
   0xa   :  { %66 = dma.hbm_to_vmem [thread:$0]  %s59_s8, 1024, %s61_s10, [#allocation9], %s1116_s1, %s1116_s1, %s1117_s14  }
   0xb   :  { %s45_s17 = sshll.u32 %s1277_s2, 4  ;;  %s1118_s18 = smov [#allocation2]   ;;  %s46_s17 = int_to_ptr.hbm [resolvable:$true] %s45_s17 }
   0xc   :  { %s26_s19 = sshll.u32 %s1118_s18, 4  ;;  %s1119_s3 = smov [#allocation7]   ;;  %s27_s19 = int_to_ptr.vmem [resolvable:$true] %s26_s19 }
   0xd   :  { %29 = dma.hbm_to_vmem [thread:$0]  %s25_s13, 128, %s27_s19, [#allocation3]  }
   0xe   :  { %s47_s20 = sshll.u32 %s1119_s3, 4  ;;  %s71_s0 = sshll.u32 %s1279_s4, 4  ;;  %s48_s20 = int_to_ptr.vmem [resolvable:$true] %s47_s20  ;;  %s72_s0 = int_to_ptr.hbm [resolvable:$true] %s71_s0 }
   0xf   :  { %53 = dma.hbm_to_vmem [thread:$0]  %s46_s17, 1024, %s48_s20, [#allocation6], %s1116_s1, %s1116_s1, %s1117_s14  }
  0x10   :  { %s85_s25 = sshll.u32 %s1280_s5, 4  ;;  %s1120_s26 = smov [#allocation10]   ;;  %s86_s25 = int_to_ptr.hbm [resolvable:$true] %s85_s25 }
  0x11   :  { %s73_s2 = sshll.u32 %s1120_s26, 4  ;;  %s1121_s27 = smov [#allocation11]   ;;  %s74_s2 = int_to_ptr.vmem [resolvable:$true] %s73_s2 }
  0x12   :  { %79 = dma.hbm_to_vmem [thread:$0]  %s72_s0, 6144, %s74_s2, [#allocation9], %s1116_s1, %s1116_s1, %s1117_s14  }
  0x13   :  { %s87_s28 = sshll.u32 %s1121_s27, 4  ;;  %s88_s28 = int_to_ptr.vmem [resolvable:$true] %s87_s28 }
  0x14   :  { %90 = dma.hbm_to_vmem [thread:$0]  %s86_s25, 128, %s88_s28, [#allocation12]  }
  0x15   :  { %1102 = dma.done.wait [#allocation3], 128  }
  0x16   :  { %1103 = vsyncadd [#allocation3], 4294967168 }
  0x17   :  { %1104 = dma.done.wait [#allocation6], 1152  }
  0x18   :  { %1105 = vsyncadd [#allocation6], 4294966144 }
  0x19   :  { %1106 = dma.done.wait [#allocation9], 7168  }
  0x1a   :  { %1107 = vsyncadd [#allocation9], 4294960128 }
  0x1b   :  { %1108 = dma.done.wait [#allocation12], 128  }
  0x1c   :  { %1109 = vsyncadd [#allocation12], 4294967168  ;;  %v170_v0 = vld [vmem:[#allocation10 + $0x58] sm:$0xff]  ;;  %v169_v1 = vld [vmem:[#allocation10 + $0x50] sm:$0xff]  ;;  %vm139_vm0 = vcmask 261120   ;;  %vm171_vm1 = vcmask 523264  }
  0x1d   :  { %v136_v2 = vld [vmem:[#allocation10 + $0x18] sm:$0xff]  ;;  %204 = vmatpush.msra.mxu1 %v170_v0  ;;  %822 = vmatpush.msra.mxu2 %v170_v0  ;;  %v135_v3 = vld [vmem:[#allocation10 + $0x10] sm:$0xff]  ;;  %v168_v4 = vld [vmem:[#allocation10 + $0x48] sm:$0xff]  ;;  %vm277_vm2 = vcmask 130048   ;;  %vm522_vm3 = vcmask 1041409   ;;  %vm524_vm4 = vcmask 1042434  }
  0x1e   :  { %823 = vmatpush.msra.mxu3 %v170_v0  ;;  %155 = vmatpush.msra.mxu0 %v136_v2  ;;  %v134_v5 = vld [vmem:[#allocation10 + $0x8] sm:$0xff]  ;;  %v167_v6 = vld [vmem:[#allocation10 + $0x40] sm:$0xff]  ;;  %v166_v8 = vld [vmem:[#allocation10 + $0x38] sm:$0xff]  ;;  %vm526_vm5 = vcmask 1043459   ;;  %vm528_vm6 = vcmask 1044484   ;;  %vm530_vm7 = vcmask 1045509  }
  0x1f   :  { %205 = vmatpush.msra.mxu1 %v169_v1  ;;  %824 = vmatpush.msra.mxu2 %v169_v1  ;;  %v133_v7 = vld [vmem:[#allocation10] sm:$0xff]  ;;  %v1185_v9 = vld [vmem:[#allocation5] sm:$0xff]  ;;  %v165_v10 = vld [vmem:[#allocation10 + $0x30] sm:$0xff]  ;;  %vm532_vm8 = vcmask 1046534   ;;  %vm534_vm9 = vcmask 1047559   ;;  %s1122_s4 = smov 64  }
  0x20   :  { %825 = vmatpush.msra.mxu3 %v169_v1  ;;  %156 = vmatpush.msra.mxu0 %v135_v3  ;;  %v164_v11 = vld [vmem:[#allocation10 + $0x28] sm:$0xff]  ;;  %v163_v12 = vld [vmem:[#allocation10 + $0x20] sm:$0xff]  ;;  %v123_v15 = vld [vmem:[#allocation7 + $0x30] sm:$0xff]  ;;  %s1123_s5 = smov 32   ;;  %s1124_s29 = smov 96  }
  0x21   :  { %206 = vmatpush.msra.mxu1 %v168_v4  ;;  %826 = vmatpush.msra.mxu2 %v168_v4  ;;  %v117_v13 = vld [vmem:[#allocation7] sm:$0xff]  ;;  %v118_v16 = vld [vmem:[#allocation7 + $0x8] sm:$0xff]  ;;  %v124_v18 = vld [vmem:[#allocation7 + $0x38] sm:$0xff]  ;;  %s1125_s30 = smov [#allocation14]   ;;  %s787_s11 = sshll.u32 %s1282_s7, 4  ;;  %s788_s11 = int_to_ptr.hbm [resolvable:$true] %s787_s11 }
  0x22   :  { %827 = vmatpush.msra.mxu3 %v168_v4  ;;  %157 = vmatpush.msra.mxu0 %v134_v5  ;;  %v121_v14 = vld [vmem:[#allocation7 + $0x20] sm:$0xff]  ;;  %v122_v17 = vld [vmem:[#allocation7 + $0x28] sm:$0xff]  ;;  %v119_v19 = vld [vmem:[#allocation7 + $0x10] sm:$0xff]  ;;  %s785_s8 = sshll.u32 %s1125_s30, 4  ;;  %s1126_s12 = smov [#allocation13]   ;;  %s786_s8 = int_to_ptr.vmem [resolvable:$true] %s785_s8 }
  0x23   :  { %207 = vmatpush.msra.mxu1 %v167_v6  ;;  %828 = vmatpush.msra.mxu2 %v167_v6  ;;  %v120_v20 = vld [vmem:[#allocation7 + $0x18] sm:$0xff]  ;;  %v851_v21 = vld [vmem:[#allocation11] ss:$0 sm:$0xff]  ;;  %s774_s13 = sshll.u32 %s1126_s12, 4  ;;  %s776_s15 = sshll.u32 %s1281_s6, 4  ;;  %s775_s13 = int_to_ptr.vmem [resolvable:$true] %s774_s13  ;;  %s777_s15 = int_to_ptr.hbm [resolvable:$true] %s776_s15 }
  0x24   :  { %829 = vmatpush.msra.mxu3 %v167_v6  ;;  %158 = vmatpush.msra.mxu0 %v133_v7 }
  0x25   :  { %208 = vmatpush.msra.mxu1 %v166_v8  ;;  %830 = vmatpush.msra.mxu2 %v166_v8 }
  0x26   :  { %831 = vmatpush.msra.mxu3 %v166_v8  ;;  %805 = vmatmul.msk.f32.vlgmr.msra.gmra.mxu0 %vm139_vm0, %v1185_v9 }
  0x27   :  { %209 = vmatpush.msra.mxu1 %v165_v10  ;;  %832 = vmatpush.msra.mxu2 %v165_v10 }
  0x28   :  { %833 = vmatpush.msra.mxu3 %v165_v10 }
  0x29   :  { %210 = vmatpush.msra.mxu1 %v164_v11  ;;  %834 = vmatpush.msra.mxu2 %v164_v11 }
  0x2a   :  { %835 = vmatpush.msra.mxu3 %v164_v11 }
  0x2b   :  { %211 = vmatpush.msra.mxu1 %v163_v12  ;;  %836 = vmatpush.msra.mxu2 %v163_v12 }
  0x2c   :  { %806 = vmatmul.msk.f32.vlgmr.msra.gmra.mxu1 %vm171_vm1, %v117_v13  ;;  %810 = vmatmul.msk.f32.vlgmr.msra.gmra.mxu2 %vm171_vm1, %v121_v14 }
  0x2d   :  { %837 = vmatpush.msra.mxu3 %v163_v12 }
  0x2e   :  { %812 = vmatmul.msk.f32.vlgmr.msra.gmra.mxu3 %vm171_vm1, %v123_v15 }
  0x34   :  { %807 = vmatmul.msk.f32.gmra.mxu1 %vm171_vm1, %v118_v16  ;;  %811 = vmatmul.msk.f32.gmra.mxu2 %vm171_vm1, %v122_v17 }
  0x36   :  { %813 = vmatmul.msk.f32.gmra.mxu3 %vm171_vm1, %v124_v18 }
  0x3c   :  { %808 = vmatmul.msk.f32.gmra.mxu1 %vm171_vm1, %v119_v19 }
  0x44   :  { %809 = vmatmul.msk.f32.gmra.mxu1 %vm171_vm1, %v120_v20 }
  0xa3   :  { %v160_v22 = vpop.f32.mrf.mxu0 }
  0xa4   :  { %v161_v23 = vadd.f32 %v851_v21, %v160_v22 }
  0xa6   :  { %v245_v24 = vperm.slane %v161_v23, 0  ;;  %v241_v25 = vrot.slane %v161_v23, 4  ;;  %v238_v28 = vrot.slane %v161_v23, 1  ;;  %v243_v30 = vrot.slane %v161_v23, 6 }
  0xa7   :  { %v242_v35 = vrot.slane %v161_v23, 5  ;;  %v239_v39 = vrot.slane %v161_v23, 2  ;;  %v240_v53 = vrot.slane %v161_v23, 3  ;;  %v244_v55 = vrot.slane %v161_v23, 7 }
  0xa8   :  { %v249_v29 = vperm.slane %v241_v25, 0  ;;  %v246_v31 = vperm.slane %v238_v28, 0  ;;  %v251_v34 = vperm.slane %v243_v30, 0 }
  0xa9   :  { %v213_v26 = vpop.f32.mrf.mxu1  ;;  %v250_v43 = vperm.slane %v242_v35, 0  ;;  %v247_v44 = vperm.slane %v239_v39, 0  ;;  %v248_v57 = vperm.slane %v240_v53, 0  ;;  %v252_v62 = vperm.slane %v244_v55, 0 }
  0xaa   :  { %v261_v27 = vadd.f32 %v245_v24, %v213_v26 }
  0xac   :  { %856 = vtanh.f32 %v261_v27 }
  0xaf   :  { %v225_v32 = vpop.f32.mrf.mxu2 }
  0xb0   :  { %v265_v33 = vadd.f32 %v249_v29, %v225_v32 }
  0xb1   :  { %v216_v36 = vpop.f32.mrf.mxu1  ;;  %v231_v40 = vpop.f32.mrf.mxu3 }
  0xb2   :  { %v857_v37 = vpop.eup %856  ;;  %858 = vtanh.f32 %v265_v33  ;;  %v262_v38 = vadd.f32 %v246_v31, %v216_v36  ;;  %v267_v42 = vadd.f32 %v251_v34, %v231_v40 }
  0xb3   :  { %v278_v41 = vsel %vm277_vm2, %v857_v37, 0.0 }
  0xb4   :  { %860 = vtanh.f32 %v262_v38  ;;  %279 = vadd.xlane.f32.xlu0 %v278_v41 }
  0xb5   :  { %862 = vtanh.f32 %v267_v42 }
  0xb7   :  { %v228_v45 = vpop.f32.mrf.mxu2 }
  0xb8   :  { %v859_v46 = vpop.eup %858  ;;  %v266_v47 = vadd.f32 %v250_v43, %v228_v45 }
  0xb9   :  { %v219_v48 = vpop.f32.mrf.mxu1  ;;  %v290_v49 = vsel %vm277_vm2, %v859_v46, 0.0  ;;  %v234_v0 = vpop.f32.mrf.mxu3 }
  0xba   :  { %v861_v50 = vpop.eup %860  ;;  %864 = vtanh.f32 %v266_v47  ;;  %v263_v51 = vadd.f32 %v247_v44, %v219_v48  ;;  %291 = vadd.xlane.f32.xlu2 %v290_v49  ;;  %v268_v2 = vadd.f32 %v252_v62, %v234_v0 }
  0xbb   :  { %v281_v52 = vsel %vm277_vm2, %v861_v50, 0.0  ;;  %v863_v54 = vpop.eup %862 }
  0xbc   :  { %866 = vtanh.f32 %v263_v51  ;;  %282 = vadd.xlane.f32.xlu0 %v281_v52  ;;  %v296_v60 = vsel %vm277_vm2, %v863_v54, 0.0 }
  0xc0   :  { %v865_v56 = vpop.eup %864 }
  0xc1   :  { %v222_v58 = vpop.f32.mrf.mxu1  ;;  %v293_v59 = vsel %vm277_vm2, %v865_v56, 0.0 }
  0xc2   :  { %v867_v61 = vpop.eup %866  ;;  %v264_v63 = vadd.f32 %v248_v57, %v222_v58  ;;  %294 = vadd.xlane.f32.xlu2 %v293_v59 }
  0xc3   :  { %v284_v1 = vsel %vm277_vm2, %v867_v61, 0.0 }
  0xc4   :  { %868 = vtanh.f32 %v264_v63  ;;  %285 = vadd.xlane.f32.xlu1 %v284_v1  ;;  %297 = vadd.xlane.f32.xlu0 %v296_v60 }
  0xc5   :  { %870 = vtanh.f32 %v268_v2 }
  0xca   :  { %v869_v3 = vpop.eup %868 }
  0xcb   :  { %v287_v4 = vsel %vm277_vm2, %v869_v3, 0.0  ;;  %v871_v5 = vpop.eup %870 }
  0xcc   :  { %288 = vadd.xlane.f32.xlu1 %v287_v4  ;;  %v299_v6 = vsel %vm277_vm2, %v871_v5, 0.0 }
  0xd4   :  { %300 = vadd.xlane.f32.xlu1 %v299_v6 }
 0x127   :  { %v280_v7 = vpop.xlane.xlu0 %279 }
 0x128   :  { %v302_v8 = vrot.slane %v280_v7, 4 }
 0x12a   :  { %v303_v10 = vmax.f32 %v280_v7, %v302_v8 }
 0x12c   :  { %v304_v11 = vrot.slane %v303_v10, 2 }
 0x12d   :  { %v292_v12 = vpop.xlane.xlu2 %291 }
 0x12e   :  { %v305_v13 = vmax.f32 %v303_v10, %v304_v11  ;;  %v326_v14 = vrot.slane %v292_v12, 4 }
 0x12f   :  { %v283_v15 = vpop.xlane.xlu0 %282 }
 0x130   :  { %v306_v16 = vrot.slane %v305_v13, 1  ;;  %v327_v17 = vmax.f32 %v292_v12, %v326_v14  ;;  %v308_v18 = vrot.slane %v283_v15, 4 }
 0x132   :  { %v307_v19 = vmax.f32 %v305_v13, %v306_v16  ;;  %v328_v20 = vrot.slane %v327_v17, 2  ;;  %v309_v21 = vmax.f32 %v283_v15, %v308_v18 }
 0x134   :  { %v350_v22 = vsub.f32 %v280_v7, %v307_v19  ;;  %v329_v23 = vmax.f32 %v327_v17, %v328_v20  ;;  %v310_v24 = vrot.slane %v309_v21, 2 }
 0x135   :  { %v295_v25 = vpop.xlane.xlu2 %294 }
 0x136   :  { %v358_v26 = vmul.f32 1.442695, %v350_v22  ;;  %v330_v27 = vrot.slane %v329_v23, 1  ;;  %v311_v28 = vmax.f32 %v309_v21, %v310_v24  ;;  %v332_v29 = vrot.slane %v295_v25, 4 }
 0x137   :  { %v286_v30 = vpop.xlane.xlu1 %285  ;;  %v298_v31 = vpop.xlane.xlu0 %297 }
 0x138   :  { %872 = vpow2.f32 %v358_v26  ;;  %v331_v32 = vmax.f32 %v329_v23, %v330_v27  ;;  %v312_v33 = vrot.slane %v311_v28, 1  ;;  %v333_v34 = vmax.f32 %v295_v25, %v332_v29  ;;  %v512_v29 = vld [vmem:[#allocation10 + $0xb0] sm:$0xff] }
 0x139   :  { %v314_v35 = vrot.slane %v286_v30, 4  ;;  %v338_v36 = vrot.slane %v298_v31, 4 }
 0x13a   :  { %v354_v37 = vsub.f32 %v292_v12, %v331_v32  ;;  %v313_v38 = vmax.f32 %v311_v28, %v312_v33  ;;  %v334_v39 = vrot.slane %v333_v34, 2  ;;  %v513_v28 = vld [vmem:[#allocation10 + $0xb8] sm:$0xff] }
 0x13b   :  { %v315_v40 = vmax.f32 %v286_v30, %v314_v35  ;;  %v339_v41 = vmax.f32 %v298_v31, %v338_v36  ;;  %546 = vmatpush.msrb.mxu2 %v513_v28  ;;  %v511_v35 = vld [vmem:[#allocation10 + $0xa8] sm:$0xff]  ;;  %v505_v36 = vld [vmem:[#allocation10 + $0x78] sm:$0xff] }
 0x13c   :  { %v366_v42 = vmul.f32 1.442695, %v354_v37  ;;  %v351_v43 = vsub.f32 %v283_v15, %v313_v38  ;;  %v335_v44 = vmax.f32 %v333_v34, %v334_v39  ;;  %573 = vmatpush.msrb.mxu0 %v505_v36  ;;  %v127_v36 = vld [vmem:[#allocation8 + $0x10] sm:$0xff] }
 0x13d   :  { %v316_v45 = vrot.slane %v315_v40, 2  ;;  %v340_v46 = vrot.slane %v339_v41, 2  ;;  %547 = vmatpush.msrb.mxu2 %v512_v29  ;;  %v130_v29 = vld [vmem:[#allocation8 + $0x28] sm:$0xff] }
 0x13e   :  { %v1205_v47 = vpop.eup %872  ;;  %874 = vpow2.f32 %v366_v42  ;;  %v360_v48 = vmul.f32 1.442695, %v351_v43  ;;  %v336_v49 = vrot.slane %v335_v44, 1 }
 0x13f   :  { %v374_v50 = vrot.slane %v1205_v47, 4  ;;  %v317_v51 = vmax.f32 %v315_v40, %v316_v45  ;;  %v341_v52 = vmax.f32 %v339_v41, %v340_v46  ;;  %v289_v53 = vpop.xlane.xlu1 %288  ;;  %548 = vmatpush.msrb.mxu2 %v511_v35 }
 0x140   :  { %876 = vpow2.f32 %v360_v48  ;;  %v337_v54 = vmax.f32 %v335_v44, %v336_v49  ;;  %v320_v55 = vrot.slane %v289_v53, 4  ;;  %v510_v44 = vld [vmem:[#allocation10 + $0xa0] sm:$0xff] }
 0x141   :  { %v375_v56 = vadd.f32 %v1205_v47, %v374_v50  ;;  %v318_v57 = vrot.slane %v317_v51, 1  ;;  %v342_v58 = vrot.slane %v341_v52, 1  ;;  %549 = vmatpush.msrb.mxu2 %v510_v44 }
 0x142   :  { %v355_v59 = vsub.f32 %v295_v25, %v337_v54  ;;  %v321_v60 = vmax.f32 %v289_v53, %v320_v55 }
 0x143   :  { %v376_v61 = vrot.slane %v375_v56, 2  ;;  %v319_v62 = vmax.f32 %v317_v51, %v318_v57  ;;  %v343_v63 = vmax.f32 %v341_v52, %v342_v58  ;;  %v509_v51 = vld [vmem:[#allocation10 + $0x98] sm:$0xff]  ;;  %v508_v57 = vld [vmem:[#allocation10 + $0x90] sm:$0xff] }
 0x144   :  { %v1209_v0 = vpop.eup %874  ;;  %v368_v1 = vmul.f32 1.442695, %v355_v59  ;;  %v322_v2 = vrot.slane %v321_v60, 2  ;;  %550 = vmatpush.msrb.mxu2 %v509_v51  ;;  %v616_v51 = vld [vmem:[#allocation10 + $0xf8] sm:$0xff] }
 0x145   :  { %v377_v3 = vadd.f32 %v376_v61, %v375_v56  ;;  %v398_v4 = vrot.slane %v1209_v0, 4  ;;  %v352_v5 = vsub.f32 %v286_v30, %v319_v62  ;;  %v356_v6 = vsub.f32 %v298_v31, %v343_v63  ;;  %v507_v63 = vld [vmem:[#allocation10 + $0x88] sm:$0xff]  ;;  %631 = vmatpush.msrb.mxu3 %v616_v51 }
 0x146   :  { %v1212_v7 = vpop.eup %876  ;;  %878 = vpow2.f32 %v368_v1  ;;  %v323_v8 = vmax.f32 %v321_v60, %v322_v2  ;;  %551 = vmatpush.msrb.mxu2 %v508_v57 }
 0x147   :  { %v378_v10 = vrot.slane %v377_v3, 1  ;;  %v399_v11 = vadd.f32 %v1209_v0, %v398_v4  ;;  %v380_v12 = vrot.slane %v1212_v7, 4  ;;  %v362_v13 = vmul.f32 1.442695, %v352_v5  ;;  %v301_v14 = vpop.xlane.xlu1 %300 }
 0x148   :  { %v370_v15 = vmul.f32 1.442695, %v356_v6  ;;  %v324_v16 = vrot.slane %v323_v8, 1  ;;  %v344_v17 = vrot.slane %v301_v14, 4  ;;  %v125_v6 = vld [vmem:[#allocation8] sm:$0xff]  ;;  %552 = vmatpush.msrb.mxu2 %v507_v63 }
 0x149   :  { %v400_v18 = vrot.slane %v399_v11, 2  ;;  %v381_v19 = vadd.f32 %v1212_v7, %v380_v12  ;;  %880 = vpow2.f32 %v362_v13  ;;  %v379_v20 = vadd.f32 %v378_v10, %v377_v3  ;;  %v506_v10 = vld [vmem:[#allocation10 + $0x80] sm:$0xff]  ;;  %v126_v12 = vld [vmem:[#allocation8 + $0x8] sm:$0xff] }
 0x14a   :  { %882 = vpow2.f32 %v370_v15  ;;  %v325_v21 = vmax.f32 %v323_v8, %v324_v16  ;;  %v345_v22 = vmax.f32 %v301_v14, %v344_v17  ;;  %553 = vmatpush.msrb.mxu2 %v506_v10 }
 0x14b   :  { %v401_v23 = vadd.f32 %v400_v18, %v399_v11  ;;  %v382_v24 = vrot.slane %v381_v19, 2  ;;  %884 = vrcp.f32 %v379_v20 }
 0x14c   :  { %v1217_v25 = vpop.eup %878  ;;  %v353_v26 = vsub.f32 %v289_v53, %v325_v21  ;;  %v346_v27 = vrot.slane %v345_v22, 2  ;;  %v129_v21 = vld [vmem:[#allocation8 + $0x20] sm:$0xff] }
 0x14d   :  { %v402_v30 = vrot.slane %v401_v23, 1  ;;  %v383_v31 = vadd.f32 %v382_v24, %v381_v19  ;;  %v404_v32 = vrot.slane %v1217_v25, 4 }
 0x14e   :  { %v364_v33 = vmul.f32 1.442695, %v353_v26  ;;  %v347_v34 = vmax.f32 %v345_v22, %v346_v27 }
 0x14f   :  { %v1220_v37 = vpop.eup %880  ;;  %v403_v38 = vadd.f32 %v402_v30, %v401_v23  ;;  %v384_v39 = vrot.slane %v383_v31, 1  ;;  %v405_v40 = vadd.f32 %v1217_v25, %v404_v32 }
 0x150   :  { %v1223_v41 = vpop.eup %882  ;;  %v386_v42 = vrot.slane %v1220_v37, 4  ;;  %886 = vpow2.f32 %v364_v33  ;;  %v348_v43 = vrot.slane %v347_v34, 1 }
 0x151   :  { %v385_v45 = vadd.f32 %v384_v39, %v383_v31  ;;  %v406_v46 = vrot.slane %v405_v40, 2  ;;  %v410_v48 = vrot.slane %v1223_v41, 4  ;;  %888 = vrcp.f32 %v403_v38  ;;  %v885_v54 = vpop.eup %884 }
 0x152   :  { %v387_v49 = vadd.f32 %v1220_v37, %v386_v42  ;;  %v349_v50 = vmax.f32 %v347_v34, %v348_v43  ;;  %v430_v1 = vmul.f32 %v885_v54, %v1205_v47  ;;  %v131_v43 = vld [vmem:[#allocation8 + $0x30] sm:$0xff] }
 0x153   :  { %890 = vrcp.f32 %v385_v45  ;;  %v407_v52 = vadd.f32 %v406_v46, %v405_v40  ;;  %v411_v53 = vadd.f32 %v1223_v41, %v410_v48  ;;  %v504_v46 = vld [vmem:[#allocation10 + $0x70] sm:$0xff] }
 0x154   :  { %v388_v55 = vrot.slane %v387_v49, 2  ;;  %v357_v56 = vsub.f32 %v301_v14, %v349_v50  ;;  %v438_v16 = vmul.f32 %v430_v1, %v125_v6  ;;  %574 = vmatpush.msrb.mxu0 %v504_v46  ;;  %v128_v1 = vld [vmem:[#allocation8 + $0x18] sm:$0xff]  ;;  %v613_v6 = vld [vmem:[#allocation10 + $0xe0] sm:$0xff] }
 0x155   :  { %v408_v58 = vrot.slane %v407_v52, 1  ;;  %v412_v59 = vrot.slane %v411_v53, 2 }
 0x156   :  { %v1229_v60 = vpop.eup %886  ;;  %v389_v61 = vadd.f32 %v388_v55, %v387_v49  ;;  %v372_v62 = vmul.f32 1.442695, %v357_v56  ;;  %v446_v27 = vsel %vm171_vm1, %v438_v16, 0.0  ;;  %v585_v16 = vld [vmem:[#allocation10 + $0xc8] sm:$0xff] }
 0x157   :  { %v409_v2 = vadd.f32 %v408_v58, %v407_v52  ;;  %v413_v3 = vadd.f32 %v412_v59, %v411_v53  ;;  %v392_v4 = vrot.slane %v1229_v60, 4  ;;  %v889_v5 = vpop.eup %888  ;;  %v447_v35 = vrot.slane %v446_v27, 4  ;;  %v615_v52 = vld [vmem:[#allocation10 + $0xf0] sm:$0xff]  ;;  %v614_v59 = vld [vmem:[#allocation10 + $0xe8] sm:$0xff] }
 0x158   :  { %v390_v8 = vrot.slane %v389_v61, 1  ;;  %892 = vpow2.f32 %v372_v62  ;;  %v434_v17 = vmul.f32 %v889_v5, %v1209_v0  ;;  %632 = vmatpush.msrb.mxu3 %v615_v52  ;;  %v587_v62 = vld [vmem:[#allocation10 + $0xd8] sm:$0xff] }
 0x159   :  { %v891_v11 = vpop.eup %890  ;;  %894 = vrcp.f32 %v409_v2  ;;  %v414_v13 = vrot.slane %v413_v3, 1  ;;  %v393_v14 = vadd.f32 %v1229_v60, %v392_v4  ;;  %v448_v56 = vadd.f32 %v447_v35, %v446_v27 }
 0x15a   :  { %v431_v15 = vmul.f32 %v891_v11, %v1212_v7  ;;  %v391_v47 = vadd.f32 %v390_v8, %v389_v61  ;;  %v442_v0 = vmul.f32 %v434_v17, %v129_v21  ;;  %633 = vmatpush.msrb.mxu3 %v614_v59  ;;  %v584_v21 = vld [vmem:[#allocation10 + $0xc0] sm:$0xff] }
 0x15b   :  { %v415_v18 = vadd.f32 %v414_v13, %v413_v3  ;;  %v394_v19 = vrot.slane %v393_v14, 2  ;;  %v449_v13 = vrot.slane %v448_v56, 2 }
 0x15c   :  { %v439_v20 = vmul.f32 %v431_v15, %v126_v12  ;;  %896 = vrcp.f32 %v391_v47  ;;  %v474_v44 = vsel %vm171_vm1, %v442_v0, 0.0  ;;  %v586_v12 = vld [vmem:[#allocation10 + $0xd0] sm:$0xff]  ;;  %634 = vmatpush.msrb.mxu3 %v613_v6  ;;  %v689_v6 = vld [vmem:[#allocation10 + $0x140] sm:$0xff] }
 0x15d   :  { %898 = vrcp.f32 %v415_v18  ;;  %v395_v22 = vadd.f32 %v394_v19, %v393_v14  ;;  %v475_v54 = vrot.slane %v474_v44, 4  ;;  %817 = vmatmul.msk.f32.vlgmr.msrb.gmra.mxu3 %vm139_vm0, %v1185_v9 }
 0x15e   :  { %v1236_v23 = vpop.eup %892  ;;  %v453_v24 = vsel %vm171_vm1, %v439_v20, 0.0 }
 0x15f   :  { %v895_v26 = vpop.eup %894  ;;  %v396_v7 = vrot.slane %v395_v22, 1  ;;  %v416_v28 = vrot.slane %v1236_v23, 4  ;;  %v454_v31 = vrot.slane %v453_v24, 4  ;;  %v476_v11 = vadd.f32 %v475_v54, %v474_v44 }
 0x160   :  { %v435_v30 = vmul.f32 %v895_v26, %v1217_v25  ;;  %v503_v25 = vld [vmem:[#allocation10 + $0x68] sm:$0xff]  ;;  %v692_v26 = vld [vmem:[#allocation10 + $0x158] sm:$0xff] }
 0x161   :  { %v397_v32 = vadd.f32 %v396_v7, %v395_v22  ;;  %v417_v33 = vadd.f32 %v1236_v23, %v416_v28  ;;  %v455_v48 = vadd.f32 %v454_v31, %v453_v24  ;;  %575 = vmatpush.msrb.mxu0 %v503_v25  ;;  %v477_v20 = vrot.slane %v476_v11, 2  ;;  %v132_v28 = vld [vmem:[#allocation8 + $0x38] sm:$0xff] }
 0x162   :  { %v897_v34 = vpop.eup %896  ;;  %v443_v38 = vmul.f32 %v435_v30, %v130_v29  ;;  %v450_v22 = vadd.f32 %v449_v13, %v448_v56  ;;  %v853_v13 = vld [vmem:[#allocation11 + $0x3] ss:$0 sm:$0xff] }
 0x163   :  { %v899_v39 = vpop.eup %898  ;;  %v432_v40 = vmul.f32 %v897_v34, %v1220_v37  ;;  %900 = vrcp.f32 %v397_v32  ;;  %v418_v42 = vrot.slane %v417_v33, 2  ;;  %v502_v37 = vld [vmem:[#allocation10 + $0x60] sm:$0xff]  ;;  %v456_v3 = vrot.slane %v455_v48, 2 }
 0x164   :  { %v436_v45 = vmul.f32 %v899_v39, %v1223_v41  ;;  %v481_v55 = vsel %vm171_vm1, %v443_v38, 0.0  ;;  %v1248_v41 = vld [vmem:[#allocation2] sm:$0xff]  ;;  %576 = vmatpush.msrb.mxu0 %v502_v37  ;;  %v451_v34 = vrot.slane %v450_v22, 1 }
 0x165   :  { %v440_v49 = vmul.f32 %v432_v40, %v127_v36  ;;  %v419_v50 = vadd.f32 %v418_v42, %v417_v33  ;;  %v482_v4 = vrot.slane %v481_v55, 4  ;;  %815 = vmatmul.msk.f32.vlgmr.msrb.gmra.mxu0 %vm139_vm0, %v1248_v41  ;;  %v457_v17 = vadd.f32 %v456_v3, %v455_v48 }
 0x166   :  { %v444_v53 = vmul.f32 %v436_v45, %v131_v43  ;;  %605 = vmatpush.msra.mxu0 %v587_v62  ;;  %v478_v33 = vadd.f32 %v477_v20, %v476_v11  ;;  %v452_v46 = vadd.f32 %v451_v34, %v450_v22  ;;  %v686_v11 = vld [vmem:[#allocation10 + $0x128] sm:$0xff] }
 0x167   :  { %v420_v57 = vrot.slane %v419_v50, 1  ;;  %v460_v58 = vsel %vm171_vm1, %v440_v49, 0.0  ;;  %v483_v18 = vadd.f32 %v482_v4, %v481_v55  ;;  %v458_v29 = vrot.slane %v457_v17, 1  ;;  %v691_v4 = vld [vmem:[#allocation10 + $0x150] sm:$0xff] }
 0x168   :  { %v461_v61 = vrot.slane %v460_v58, 4  ;;  %v488_v5 = vsel %vm171_vm1, %v444_v53, 0.0  ;;  %606 = vmatpush.msra.mxu0 %v586_v12  ;;  %v479_v44 = vrot.slane %v478_v33, 1  ;;  %v685_v12 = vld [vmem:[#allocation10 + $0x120] sm:$0xff] }
 0x169   :  { %v901_v63 = vpop.eup %900  ;;  %v421_v2 = vadd.f32 %v420_v57, %v419_v50  ;;  %v489_v47 = vrot.slane %v488_v5, 4  ;;  %v484_v30 = vrot.slane %v483_v18, 2  ;;  %v459_v39 = vadd.f32 %v458_v29, %v457_v17 }
 0x16a   :  { %v433_v8 = vmul.f32 %v901_v63, %v1229_v60  ;;  %v462_v10 = vadd.f32 %v461_v61, %v460_v58  ;;  %607 = vmatpush.msra.mxu0 %v585_v16  ;;  %v480_v53 = vadd.f32 %v479_v44, %v478_v33  ;;  %v852_v16 = vld [vmem:[#allocation11 + $0x1] ss:$0 sm:$0xff]  ;;  %v741_v44 = vld [vmem:[#allocation10 + $0x178] sm:$0xff] }
 0x16b   :  { %902 = vrcp.f32 %v421_v2  ;;  %v490_v27 = vadd.f32 %v489_v47, %v488_v5  ;;  %v485_v42 = vadd.f32 %v484_v30, %v483_v18  ;;  %v523_v52 = vsel %vm522_vm3, %v459_v39, %v452_v46  ;;  %v690_v5 = vld [vmem:[#allocation10 + $0x148] sm:$0xff]  ;;  %754 = vmatpush.msra.mxu3 %v741_v44 }
 0x16c   :  { %v441_v14 = vmul.f32 %v433_v8, %v128_v1  ;;  %v463_v15 = vrot.slane %v462_v10, 2  ;;  %608 = vmatpush.msra.mxu0 %v584_v21  ;;  %v688_v8 = vld [vmem:[#allocation10 + $0x138] sm:$0xff]  ;;  %v682_v46 = vld [vmem:[#allocation10 + $0x108] sm:$0xff] }
 0x16d   :  { %v491_v38 = vrot.slane %v490_v27, 2  ;;  %v486_v50 = vrot.slane %v485_v42, 1 }
 0x16e   :  { %v464_v60 = vadd.f32 %v463_v15, %v462_v10  ;;  %v467_v19 = vsel %vm171_vm1, %v441_v14, 0.0  ;;  %701 = vmatpush.msrb.mxu0 %v692_v26  ;;  %v687_v10 = vld [vmem:[#allocation10 + $0x130] sm:$0xff] }
 0x16f   :  { %v468_v24 = vrot.slane %v467_v19, 4  ;;  %v487_v58 = vadd.f32 %v486_v50, %v485_v42  ;;  %v684_v42 = vld [vmem:[#allocation10 + $0x118] sm:$0xff] }
 0x170   :  { %v465_v32 = vrot.slane %v464_v60, 1  ;;  %702 = vmatpush.msrb.mxu0 %v691_v4  ;;  %730 = vmatpush.msra.mxu2 %v684_v42 }
 0x171   :  { %v903_v7 = vpop.eup %902  ;;  %v469_v0 = vadd.f32 %v468_v24, %v467_v19  ;;  %v854_v19 = vld [vmem:[#allocation11 + $0x2] ss:$0 sm:$0xff] }
 0x172   :  { %v437_v31 = vmul.f32 %v903_v7, %v1236_v23  ;;  %v466_v43 = vadd.f32 %v465_v32, %v464_v60  ;;  %v492_v23 = vadd.f32 %v491_v38, %v490_v27  ;;  %703 = vmatpush.msrb.mxu0 %v690_v5 }
 0x173   :  { %v470_v35 = vrot.slane %v469_v0, 2 }
 0x174   :  { %v445_v36 = vmul.f32 %v437_v31, %v132_v28  ;;  %v525_v54 = vsel %vm524_vm4, %v466_v43, %v523_v52  ;;  %v493_v56 = vrot.slane %v492_v23, 1  ;;  %704 = vmatpush.msrb.mxu0 %v689_v6  ;;  %v683_v43 = vld [vmem:[#allocation10 + $0x110] sm:$0xff] }
 0x175   :  { %v471_v40 = vadd.f32 %v470_v35, %v469_v0  ;;  %731 = vmatpush.msra.mxu2 %v683_v43 }
 0x176   :  { %v495_v45 = vsel %vm171_vm1, %v445_v36, 0.0  ;;  %v494_v63 = vadd.f32 %v493_v56, %v492_v23  ;;  %705 = vmatpush.msrb.mxu0 %v688_v8 }
 0x177   :  { %v472_v25 = vrot.slane %v471_v40, 1  ;;  %v496_v48 = vrot.slane %v495_v45, 4  ;;  %732 = vmatpush.msra.mxu2 %v682_v46 }
 0x178   :  { %706 = vmatpush.msrb.mxu0 %v687_v10 }
 0x179   :  { %v473_v49 = vadd.f32 %v472_v25, %v471_v40  ;;  %v497_v51 = vadd.f32 %v496_v48, %v495_v45  ;;  %v740_v45 = vld [vmem:[#allocation10 + $0x170] sm:$0xff]  ;;  %v739_v25 = vld [vmem:[#allocation10 + $0x168] sm:$0xff]  ;;  %v681_v48 = vld [vmem:[#allocation10 + $0x100] sm:$0xff] }
 0x17a   :  { %707 = vmatpush.msrb.mxu0 %v686_v11  ;;  %755 = vmatpush.msra.mxu3 %v740_v45 }
 0x17b   :  { %v498_v55 = vrot.slane %v497_v51, 2  ;;  %v527_v37 = vsel %vm526_vm5, %v473_v49, %v525_v54  ;;  %733 = vmatpush.msra.mxu2 %v681_v48  ;;  %v738_v54 = vld [vmem:[#allocation10 + $0x160] sm:$0xff] }
 0x17c   :  { %v529_v57 = vsel %vm528_vm6, %v480_v53, %v527_v37  ;;  %708 = vmatpush.msrb.mxu0 %v685_v12  ;;  %756 = vmatpush.msra.mxu3 %v739_v25 }
 0x17d   :  { %v499_v59 = vadd.f32 %v498_v55, %v497_v51  ;;  %v531_v62 = vsel %vm530_vm7, %v487_v58, %v529_v57 }
 0x17e   :  { %v533_v2 = vsel %vm532_vm8, %v494_v63, %v531_v62  ;;  %757 = vmatpush.msra.mxu3 %v738_v54 }
 0x17f   :  { %v500_v61 = vrot.slane %v499_v59, 1  ;;  %821 = vmatmul.msk.f32.vlgmr.msra.gmra.mxu3 %vm139_vm0, %v1248_v41 }
 0x181   :  { %v501_v1 = vadd.f32 %v500_v61, %v499_v59  ;;  %v855_v59 = vld [vmem:[#allocation11 + $0x4] ss:$0 sm:$0xff] }
 0x183   :  { %v535_v3 = vsel %vm534_vm9, %v501_v1, %v533_v2 }
 0x184   :  { %814 = vmatmul.msk.f32.vlgmr.msrb.gmra.mxu2 %vm171_vm1, %v535_v3 }
 0x1e0   :  { %v636_v14 = vpop.f32.mrf.mxu3 }
 0x1e1   :  { %v637_v15 = vadd.f32 %v853_v13, %v636_v14 }
 0x1e2   :  { %v578_v47 = vpop.f32.mrf.mxu0 }
 0x1e3   :  { %660 = vrot.lane.b32.xlu2 %v637_v15, %s1122_s4 }
 0x1eb   :  { %676 = vrot.lane.b32.xlu2 %v1185_v9, %s1123_s5 }
 0x202   :  { %v759_v57 = vpop.f32.mrf.mxu3 }
 0x207   :  { %v555_v17 = vpop.f32.mrf.mxu2 }
 0x208   :  { %v579_v18 = vadd.f32 %v578_v47, %v555_v17 }
 0x20a   :  { %v583_v60 = vadd.f32 %v852_v16, %v579_v18 }
 0x20c   :  { %816 = vmatmul.msk.f32.vlgmr.msra.gmra.mxu0 %vm139_vm0, %v583_v60 }
 0x214   :  { %819 = vmatmul.msk.f32.vlgmr.msrb.gmra.mxu0 %vm171_vm1, %v535_v3 }
 0x23d   :  { %v661_v34 = vpop.permute.xlu2 %660 }
 0x245   :  { %v677_v23 = vpop.permute.xlu2 %676 }
 0x289   :  { %v610_v20 = vpop.f32.mrf.mxu0 }
 0x28a   :  { %v611_v21 = vadd.f32 %v854_v19, %v610_v20 }
 0x28c   :  { %v639_v22 = vadd.f32 %v637_v15, %v611_v21 }
 0x28e   :  { %v818_v24 = vmul.f32 -1.442695, %v639_v22 }
 0x290   :  { %904 = vpow2.f32 %v818_v24 }
 0x291   :  { %v710_v37 = vpop.f32.mrf.mxu0 }
 0x296   :  { %v905_v26 = vpop.eup %904 }
 0x297   :  { %v643_v27 = vadd.f32 1.0, %v905_v26 }
 0x299   :  { %906 = vrcp.f32 %v643_v27  ;;  %v655_v29 = vand.u32 2147483648, %v643_v27  ;;  %v653_v30 = vand.u32 2147483647, %v643_v27  ;;  %vm649_vm11 = vweird.f32 %v643_v27 }
 0x29b   :  { %v656_v32 = vor.u32 1.1754944e-38, %v655_v29  ;;  %vm654_vm13 = vcmp.eq.f32.partialorder %v653_v30, 8.507059e+37 }
 0x29f   :  { %v907_v7 = vpop.eup %906 }
 0x2a0   :  { %v645_v9 = vmul.f32 %v907_v7, %v643_v27  ;;  %vm650_vm10 = vweird.f32 %v907_v7 }
 0x2a1   :  { %vm651_vm12 = vmor %vm649_vm11, %vm650_vm10 }
 0x2a2   :  { %v646_v28 = vsub.f32 1.0, %v645_v9 }
 0x2a4   :  { %v647_v0 = vmul.f32 %v907_v7, %v646_v28 }
 0x2a6   :  { %v648_v31 = vadd.f32 %v907_v7, %v647_v0 }
 0x2a8   :  { %v652_v33 = vsel %vm651_vm12, %v907_v7, %v648_v31 }
 0x2a9   :  { %v657_v35 = vsel %vm654_vm13, %v656_v32, %v652_v33 }
 0x2aa   :  { %v663_v36 = vmul.f32 %v661_v34, %v657_v35  ;;  %v670_v49 = vsub.f32 1.0, %v657_v35  ;;  %v679_v51 = vmul.f32 %v677_v23, %v657_v35 }
 0x2ac   :  { %665 = vrot.lane.b32.xlu0 %v663_v36, %s1122_s4 }
 0x31e   :  { %v666_v38 = vpop.permute.xlu0 %665 }
 0x31f   :  { %v668_v39 = vadd.f32 %v666_v38, %v611_v21 }
 0x321   :  { %908 = vtanh.f32 %v668_v39 }
 0x327   :  { %v909_v40 = vpop.eup %908 }
 0x328   :  { %672 = vrot.lane.b32.xlu1 %v909_v40, %s1124_s29 }
 0x39a   :  { %v673_v50 = vpop.permute.xlu1 %672 }
 0x39b   :  { %v675_v52 = vmul.f32 %v673_v50, %v670_v49 }
 0x39d   :  { %v680_v53 = vadd.f32 %v679_v51, %v675_v52 }
 0x39f   :  { %714 = vrot.lane.b32.xlu0 %v680_v53, %s1124_s29 }
 0x411   :  { %v715_v55 = vpop.permute.xlu0 %714 }
 0x412   :  { %768 = vst.msk [vmem:[#allocation14] sm:$0xff] %vm139_vm0, %v715_v55  ;;  %820 = vmatmul.msk.f32.vlgmr.msra.gmra.mxu2 %vm139_vm0, %v715_v55 }
 0x413   :  { %790 = dma.vmem_to_hbm [thread:$0]  %s786_s8, 128, %s788_s11, [#allocation15]  }
 0x495   :  { %v735_v56 = vpop.f32.mrf.mxu2 }
 0x496   :  { %v736_v58 = vadd.f32 %v735_v56, %v710_v37 }
 0x498   :  { %v762_v41 = vadd.f32 %v759_v57, %v736_v58 }
 0x49a   :  { %v765_v61 = vadd.f32 %v855_v59, %v762_v41 }
 0x49c   :  { %766 = vst [vmem:[#allocation13] sm:$0xff] %v765_v61 }
 0x49d   :  { %779 = dma.vmem_to_hbm [thread:$0]  %s775_s13, 128, %s777_s15, [#allocation4]  }
 0x49e   :  { %1110 = dma.done.wait [#allocation4], 128  }
 0x49f   :  { %1111 = vsyncadd [#allocation4], 4294967168 }
 0x4a0   :  { %1112 = dma.done.wait [#allocation15], 128  }
 0x4a1   :  { %1113 = vsyncadd [#allocation15], 4294967168 }
 0x4a2   :  { %799 = vsyncpa [#allocation3], 1 }
 0x4a3   :  { %800 = vsyncpa [#allocation6], 1 }
 0x4a4   :  { %801 = vsyncpa [#allocation9], 1 }
 0x4a5   :  { %802 = vsyncpa [#allocation12], 1 }
 0x4a6   :  { %803 = vsyncpa [#allocation4], 1 }
 0x4a7   :  { %804 = vsyncpa [#allocation15], 1 }

</bundles_post_ra>
